<compile_context>
chip_gen: v7x
topology: tpu7x:2x2x1
jax: 0.10.0
libtpu: 0.0.40
codegen_flags: <defaults>
</compile_context>

<pallas_src>
import functools

import jax
import jax.numpy as jnp
from jax.experimental import pallas as pl
from jax.experimental.pallas import tpu as pltpu


def _downsample_kernel(yf_ref, wd_ref, gamma_ref, beta_ref, o_ref, *scratch,
                       wal, wo, n_dh, chunk, n_full, rem, count,
                       apply_instancenorm, eps, neg_slope):
    """One batch sample per grid step.

    yf_ref:    (1, M_in, Kp)   bf16  dw-folded space-to-depth input, flat spatial
                                     (row stride = wal, multiple of 16)
    wd_ref:    (DH, Kp, Cp)    bf16  one (Kp, Cp) weight matrix per height tap
    gamma_ref: (1, Cp)         f32   GroupNorm weight (zero-padded)
    beta_ref:  (1, Cp)         f32   GroupNorm bias  (zero-padded)
    o_ref:     (1, M_out, Cp)  bf16
    scratch:   ((M_out, Cp) f32,) pre-norm conv stash, only when instance norm is on
    """
    cp = o_ref.shape[-1]

    def conv_chunk(cstart, csize):
        # DH chained accumulating matmuls; cstart and wal are multiples of 16 so every
        # bf16 slab load is sublane-aligned and no result shifting is needed.
        acc = jnp.dot(yf_ref[0, pl.ds(cstart, csize), :], wd_ref[0],
                      preferred_element_type=jnp.float32)
        for dh in range(1, n_dh):
            acc = acc + jnp.dot(yf_ref[0, pl.ds(cstart + dh * wal, csize), :],
                                wd_ref[dh], preferred_element_type=jnp.float32)
        return acc

    def valid_mask(cstart, csize):
        # in-kernel column-validity mask (pure VPU; no HBM/VMEM mask array)
        rows = jax.lax.broadcasted_iota(jnp.int32, (csize, 1), 0) + cstart
        return (rows % wal) < wo

    def run_chunks(chunk_fn, carry):
        if n_full <= 8:                                   # static unroll, exact offsets
            for i in range(n_full):
                carry = chunk_fn(i * chunk, chunk, carry)
        else:                                             # bounded code size / live ranges
            def body(i, c):
                return chunk_fn(pl.multiple_of(i * chunk, 16), chunk, c)
            carry = jax.lax.fori_loop(0, n_full, body, carry)
        if rem > 0:
            carry = chunk_fn(n_full * chunk, rem, carry)
        return carry

    if not apply_instancenorm:
        def chunk_fn(cstart, csize, c):
            acc = conv_chunk(cstart, csize)
            acc = jnp.where(acc >= 0, acc, neg_slope * acc)
            o_ref[0, pl.ds(cstart, csize), :] = acc.astype(o_ref.dtype)
            return c
        run_chunks(chunk_fn, jnp.int32(0))
        return

    conv_ref = scratch[0]
    inv_n = 1.0 / float(count)

    # ---- pass 1: conv -> f32 VMEM stash + per-channel sum (pad columns are exact 0) ----
    def pass1(cstart, csize, s1):
        acc = conv_chunk(cstart, csize)
        conv_ref[pl.ds(cstart, csize), :] = acc
        return s1 + jnp.sum(acc, axis=0, keepdims=True)

    s1 = run_chunks(pass1, jnp.zeros((1, cp), jnp.float32))
    mean = s1 * inv_n

    # ---- pass 2: centered sum of squares over the VMEM-resident stash ----
    def pass2(cstart, csize, s2):
        d = conv_ref[pl.ds(cstart, csize), :] - mean
        if wo != wal:                                     # mask pad columns (x==0 there)
            d = jnp.where(valid_mask(cstart, csize), d, 0.0)
        return s2 + jnp.sum(d * d, axis=0, keepdims=True)

    s2 = run_chunks(pass2, jnp.zeros((1, cp), jnp.float32))

    var = s2 * inv_n                                      # biased var (torch GroupNorm)
    rstd = jax.lax.rsqrt(var + eps)
    scale = gamma_ref[...] * rstd
    shift = beta_ref[...] - mean * scale

    # ---- pass 3: normalize + affine + LeakyReLU, bf16 store ----
    def pass3(cstart, csize, c):
        y = conv_ref[pl.ds(cstart, csize), :] * scale + shift
        y = jnp.where(y >= 0, y, neg_slope * y)
        o_ref[0, pl.ds(cstart, csize), :] = y.astype(o_ref.dtype)
        return c

    run_chunks(pass3, jnp.int32(0))


def downsample(x_nchw, weight, gamma=None, beta=None, *, padding=1,
               apply_instancenorm=True, eps=1e-5, neg_slope=0.2,
               compute_dtype=jnp.bfloat16, out_dtype=jnp.bfloat16,
               chunk_rows=1024):
    N, Cin, H, W = x_nchw.shape
    Cout, Cin_w, KH, KW = weight.shape
    assert Cin == Cin_w
    assert chunk_rows > 0 and chunk_rows % 16 == 0
    S = 2                                    # module is fixed at stride=2
    P = padding
    Ho = (H + 2 * P - KH) // S + 1
    Wo = (W + 2 * P - KW) // S + 1
    DH = -(-KH // S)                         # ceil(KH / S) height taps
    DW = -(-KW // S)                         # ceil(KW / S) width taps (folded into K)
    Hq = Ho + DH - 1                         # phase-image rows needed
    Wq = Wo + DW - 1                         # phase-image cols needed
    C4 = S * S * Cin
    Kp = DW * C4                             # contraction dim after dw fold
    Wal = ((Wo + 15) // 16) * 16             # flat row stride, 16-aligned (bf16 sublanes)
    M_out = Ho * Wal
    M_in = Hq * Wal
    Cp = max(128, ((Cout + 127) // 128) * 128)   # lane-dense output channels

    # ---- space-to-depth + width-tap fold (plain JAX re-pack, no full im2col) ----
    x = jnp.transpose(x_nchw, (0, 2, 3, 1))                               # NHWC
    ph_hi = P + max(0, S * Hq - (H + 2 * P))
    pw_hi = P + max(0, S * Wq - (W + 2 * P))
    xp = jnp.pad(x, ((0, 0), (P, ph_hi), (P, pw_hi), (0, 0)))
    xp = xp[:, :S * Hq, :S * Wq, :]
    # Y[n, i, j, (ph*S+pw)*Cin + c] = xp[n, S*i+ph, S*j+pw, c]
    y = xp.reshape(N, Hq, S, Wq, S, Cin)
    y = jnp.transpose(y, (0, 1, 3, 2, 4, 5)).reshape(N, Hq, Wq, C4)
    # fold the DW width taps into channels: ycat[..., j, dw*C4 + k] = Y[..., j+dw, k]
    ycat = jnp.concatenate([y[:, :, dw:dw + Wo, :] for dw in range(DW)], axis=-1)
    ycat = jnp.pad(ycat, ((0, 0), (0, 0), (0, Wal - Wo), (0, 0)))         # zero pad cols
    yf = ycat.reshape(N, M_in, Kp).astype(compute_dtype)

    # ---- weights (Cout, Cin, KH, KW) -> one (Kp, Cp) matrix per height tap ----
    wt = jnp.transpose(weight, (2, 3, 1, 0)).astype(jnp.float32)          # (KH, KW, Cin, Cout)
    wt = jnp.pad(wt, ((0, DH * S - KH), (0, DW * S - KW), (0, 0), (0, Cp - Cout)))
    wt = wt.reshape(DH, S, DW, S, Cin, Cp)                                # (dh, ph, dw, pw, ci, co)
    wt = jnp.transpose(wt, (0, 2, 1, 3, 4, 5))                            # (dh, dw, ph, pw, ci, co)
    wd = wt.reshape(DH, Kp, Cp).astype(compute_dtype)

    if gamma is None:
        gamma = jnp.ones((Cout,), jnp.float32)
    if beta is None:
        beta = jnp.zeros((Cout,), jnp.float32)
    gamma_p = jnp.pad(gamma.astype(jnp.float32), (0, Cp - Cout)).reshape(1, Cp)
    beta_p = jnp.pad(beta.astype(jnp.float32), (0, Cp - Cout)).reshape(1, Cp)

    chunk = min(chunk_rows, M_out)
    n_full = M_out // chunk
    rem = M_out - n_full * chunk             # multiple of 16

    kernel = functools.partial(
        _downsample_kernel, wal=Wal, wo=Wo, n_dh=DH, chunk=chunk,
        n_full=n_full, rem=rem, count=Ho * Wo,
        apply_instancenorm=apply_instancenorm, eps=eps, neg_slope=neg_slope)

    scratch_shapes = ([pltpu.VMEM((M_out, Cp), jnp.float32)]
                      if apply_instancenorm else [])

    # VMEM budget: double-buffered input/output, single-buffered constants + f32 stash.
    # On v7x (64 MiB/TC) shrink chunk_rows / this cap for very large layers.
    vmem_est = (2 * M_in * Kp * 2 + DH * Kp * Cp * 2 + 2 * M_out * Cp * 2
                + (M_out * Cp * 4 if apply_instancenorm else 0) + (1 << 20))
    vmem_limit = min(96 * 1024 * 1024, max(32 * 1024 * 1024, int(1.25 * vmem_est)))

    cost = pl.CostEstimate(
        flops=2 * N * Ho * Wo * KH * KW * Cin * Cout,
        transcendentals=N * Cout if apply_instancenorm else 0,
        bytes_accessed=int(yf.size) * 2 + int(wd.size) * 2 + N * M_out * Cp * 2)

    out = pl.pallas_call(
        kernel,
        out_shape=jax.ShapeDtypeStruct((N, M_out, Cp), out_dtype),
        grid=(N,),
        in_specs=[
            pl.BlockSpec((1, M_in, Kp), lambda n: (n, 0, 0)),
            # grid-constant inputs: single VMEM buffer (no pointless double-buffering)
            pl.BlockSpec((DH, Kp, Cp), lambda n: (0, 0, 0),
                         pipeline_mode=pl.Buffered(1)),
            pl.BlockSpec((1, Cp), lambda n: (0, 0), pipeline_mode=pl.Buffered(1)),
            pl.BlockSpec((1, Cp), lambda n: (0, 0), pipeline_mode=pl.Buffered(1)),
        ],
        out_specs=pl.BlockSpec((1, M_out, Cp), lambda n: (n, 0, 0)),
        scratch_shapes=scratch_shapes,
        compiler_params=pltpu.CompilerParams(
            dimension_semantics=("parallel",),
            vmem_limit_bytes=vmem_limit),
        cost_estimate=cost,
    )(yf, wd, gamma_p, beta_p)

    out = out.reshape(N, Ho, Wal, Cp)[:, :, :Wo, :Cout]
    return jnp.transpose(out, (0, 3, 1, 2)).astype(x_nchw.dtype)          # back to NCHW


def _reference(x_nchw, weight, gamma, beta, *, apply_instancenorm=True,
               eps=1e-5, neg_slope=0.2):
    """Pure-JAX reference matching the PyTorch module semantics."""
    x = jnp.transpose(x_nchw, (0, 2, 3, 1))
    w = jnp.transpose(weight, (2, 3, 1, 0))                               # HWIO
    y = jax.lax.conv_general_dilated(
        x, w, window_strides=(2, 2), padding=((1, 1), (1, 1)),
        dimension_numbers=("NHWC", "HWIO", "NHWC"))
    if apply_instancenorm:
        mean = jnp.mean(y, axis=(1, 2), keepdims=True)
        var = jnp.var(y, axis=(1, 2), keepdims=True)
        y = (y - mean) * jax.lax.rsqrt(var + eps)
        y = y * gamma.reshape(1, 1, 1, -1) + beta.reshape(1, 1, 1, -1)
    y = jnp.where(y >= 0, y, neg_slope * y)
    return jnp.transpose(y, (0, 3, 1, 2))


def _check(out, ref, atol=5e-3, rtol=2e-2):
    assert out.shape == ref.shape, (out.shape, ref.shape)
    assert jnp.allclose(out, ref, atol=atol, rtol=rtol), \
        float(jnp.max(jnp.abs(out - ref)))


if __name__ == "__main__":
    key = jax.random.PRNGKey(0)
    k_x, k_w, k_g, k_x2, k_w2, k_g2 = jax.random.split(key, 6)

    # ---- small shapes matching the module: Downsample(in=4, out=8, size=4) ----
    N, Cin, H, W = 2, 4, 16, 16
    Cout, K = 8, 4
    x = jax.random.normal(k_x, (N, Cin, H, W), dtype=jnp.float32)
    weight = 0.02 * jax.random.normal(k_w, (Cout, Cin, K, K), dtype=jnp.float32)
    gamma = 0.02 * jax.random.normal(k_g, (Cout,), dtype=jnp.float32)
    beta = jnp.zeros((Cout,), dtype=jnp.float32)

    # with instance norm (default module config)
    out = jax.block_until_ready(downsample(x, weight, gamma, beta,
                                           apply_instancenorm=True))
    assert out.shape == (N, Cout, H // 2, W // 2), out.shape
    _check(out, _reference(x, weight, gamma, beta, apply_instancenorm=True))

    # without instance norm
    out2 = jax.block_until_ready(downsample(x, weight, gamma, beta,
                                            apply_instancenorm=False))
    _check(out2, _reference(x, weight, gamma, beta, apply_instancenorm=False))

    # ---- slightly larger case: exercises multi-chunk paths (static unroll + remainder,
    #      and the fori_loop path) plus real (16,128) input tiling ----
    N2, Cin2, H2, W2, Cout2 = 1, 16, 32, 32, 32
    x2 = jax.random.normal(k_x2, (N2, Cin2, H2, W2), dtype=jnp.float32)
    w2 = 0.02 * jax.random.normal(k_w2, (Cout2, Cin2, K, K), dtype=jnp.float32)
    g2 = 0.02 * jax.random.normal(k_g2, (Cout2,), dtype=jnp.float32)
    b2 = jnp.zeros((Cout2,), dtype=jnp.float32)
    ref2 = _reference(x2, w2, g2, b2, apply_instancenorm=True)
    for cr in (48, 16):    # 5 full chunks + remainder (static) / 16 chunks (fori_loop)
        o = jax.block_until_ready(downsample(x2, w2, g2, b2,
                                             apply_instancenorm=True, chunk_rows=cr))
        _check(o, ref2)

    print("KERNEL_OK")
</pallas_src>

<mosaic_0001>
module attributes {stable_mosaic.version = 11 : i64} {
  func.func @_downsample_kernel(%arg0: i32, %arg1: memref<1x144x32xbf16, #tpu.memory_space<vmem>>, %arg2: memref<2x32x128xbf16, #tpu.memory_space<vmem>>, %arg3: memref<1x128xf32, #tpu.memory_space<vmem>>, %arg4: memref<1x128xf32, #tpu.memory_space<vmem>>, %arg5: memref<1x128x128xbf16, #tpu.memory_space<vmem>>, %arg6: memref<128x128xf32, #tpu.memory_space<vmem>>) attributes {dimension_semantics = [#tpu.dimension_semantics<parallel>], iteration_bounds = array<i64: 2>, scalar_prefetch = 0 : i64, scratch_operands = 1 : i64, tpu.core_type = #tpu.core_type<tc>, window_params = [{transform_indices = @transform_0, window_bounds = array<i64: 1, 144, 32>}, {pipeline_mode = #tpu.pipeline_mode<synchronous>, transform_indices = @transform_1, window_bounds = array<i64: 2, 32, 128>}, {pipeline_mode = #tpu.pipeline_mode<synchronous>, transform_indices = @transform_2, window_bounds = array<i64: 1, 128>}, {pipeline_mode = #tpu.pipeline_mode<synchronous>, transform_indices = @transform_3, window_bounds = array<i64: 1, 128>}, {transform_indices = @transform_4, window_bounds = array<i64: 1, 128, 128>}]} {
    %cst = arith.constant 0.000000e+00 : f32
    %0 = vector.broadcast %cst : f32 to vector<1x128xf32>
    %c0 = arith.constant 0 : index
    %c0_0 = arith.constant 0 : index
    %c0_1 = arith.constant 0 : index
    %1 = vector.load %arg1[%c0, %c0_0, %c0_1] : memref<1x144x32xbf16, #tpu.memory_space<vmem>>, vector<1x128x32xbf16>
    %2 = vector.shape_cast %1 : vector<1x128x32xbf16> to vector<128x32xbf16>
    %c0_2 = arith.constant 0 : index
    %c0_3 = arith.constant 0 : index
    %c0_4 = arith.constant 0 : index
    %3 = vector.load %arg2[%c0_2, %c0_3, %c0_4] : memref<2x32x128xbf16, #tpu.memory_space<vmem>>, vector<1x32x128xbf16>
    %4 = vector.shape_cast %3 : vector<1x32x128xbf16> to vector<32x128xbf16>
    %cst_5 = arith.constant dense<0.000000e+00> : vector<128x128xf32>
    %5 = tpu.matmul %2, %4, %cst_5 {dimension_numbers = #tpu.dot_dimension_numbers<[1], [0], [0], [1], [0, 0, 1, 1], [], []>} : vector<128x32xbf16>, vector<32x128xbf16>, vector<128x128xf32> -> vector<128x128xf32>
    %c0_6 = arith.constant 0 : index
    %c16 = arith.constant 16 : index
    %c0_7 = arith.constant 0 : index
    %6 = vector.load %arg1[%c0_6, %c16, %c0_7] : memref<1x144x32xbf16, #tpu.memory_space<vmem>>, vector<1x128x32xbf16>
    %7 = vector.shape_cast %6 : vector<1x128x32xbf16> to vector<128x32xbf16>
    %c1 = arith.constant 1 : index
    %c0_8 = arith.constant 0 : index
    %c0_9 = arith.constant 0 : index
    %8 = vector.load %arg2[%c1, %c0_8, %c0_9] : memref<2x32x128xbf16, #tpu.memory_space<vmem>>, vector<1x32x128xbf16>
    %9 = vector.shape_cast %8 : vector<1x32x128xbf16> to vector<32x128xbf16>
    %cst_10 = arith.constant dense<0.000000e+00> : vector<128x128xf32>
    %10 = tpu.matmul %7, %9, %cst_10 {dimension_numbers = #tpu.dot_dimension_numbers<[1], [0], [0], [1], [0, 0, 1, 1], [], []>} : vector<128x32xbf16>, vector<32x128xbf16>, vector<128x128xf32> -> vector<128x128xf32>
    %11 = arith.addf %5, %10 : vector<128x128xf32>
    %c0_11 = arith.constant 0 : index
    %c0_12 = arith.constant 0 : index
    %12 = vector.load %arg6[%c0_11, %c0_12] : memref<128x128xf32, #tpu.memory_space<vmem>>, vector<128x128xf32>
    tpu.vector_store %arg6[%c0_11, %c0_12], %11 {strides = array<i32>} : memref<128x128xf32, #tpu.memory_space<vmem>>, vector<128x128xf32>,
    %cst_13 = arith.constant dense<0.000000e+00> : vector<128xf32>
    %13 = vector.multi_reduction <add>, %11, %cst_13 [0] : vector<128x128xf32> to vector<128xf32>
    %14 = vector.shape_cast %13 : vector<128xf32> to vector<1x128xf32>
    %15 = arith.addf %0, %14 : vector<1x128xf32>
    %cst_14 = arith.constant 1.562500e-02 : f32
    %16 = vector.broadcast %cst_14 : f32 to vector<1x128xf32>
    %17 = arith.mulf %15, %16 : vector<1x128xf32>
    %cst_15 = arith.constant 0.000000e+00 : f32
    %18 = vector.broadcast %cst_15 : f32 to vector<1x128xf32>
    %c0_16 = arith.constant 0 : index
    %c0_17 = arith.constant 0 : index
    %19 = vector.load %arg6[%c0_16, %c0_17] : memref<128x128xf32, #tpu.memory_space<vmem>>, vector<128x128xf32>
    %20 = vector.broadcast %17 : vector<1x128xf32> to vector<128x128xf32>
    %21 = arith.subf %19, %20 : vector<128x128xf32>
    %22 = tpu.iota {dimensions = array<i32: 0>} : vector<128x1xi32>
    %c0_i32 = arith.constant 0 : i32
    %23 = vector.broadcast %c0_i32 : i32 to vector<128x1xi32>
    %24 = arith.addi %22, %23 : vector<128x1xi32>
    %c16_i32 = arith.constant 16 : i32
    %c0_i32_18 = arith.constant 0 : i32
    %25 = arith.cmpi eq, %c16_i32, %c0_i32_18 : i32
    %c1_i32 = arith.constant 1 : i32
    %26 = arith.select %25, %c1_i32, %c16_i32 : i32
    %27 = vector.broadcast %26 : i32 to vector<128x1xi32>
    %28 = arith.remsi %24, %27 : vector<128x1xi32>
    %c0_i32_19 = arith.constant 0 : i32
    %29 = vector.broadcast %c0_i32_19 : i32 to vector<128x1xi32>
    %30 = arith.cmpi ne, %28, %29 : vector<128x1xi32>
    %c0_i32_20 = arith.constant 0 : i32
    %31 = vector.broadcast %c0_i32_20 : i32 to vector<128x1xi32>
    %32 = arith.cmpi slt, %28, %31 : vector<128x1xi32>
    %c0_i32_21 = arith.constant 0 : i32
    %33 = arith.cmpi slt, %26, %c0_i32_21 : i32
    %34 = vector.broadcast %33 : i1 to vector<128x1xi1>
    %35 = vector.broadcast %34 : vector<128x1xi1> to vector<128x1xi1>
    %36 = arith.xori %32, %35 : vector<128x1xi1>
    %37 = arith.andi %36, %30 : vector<128x1xi1>
    %38 = vector.broadcast %26 : i32 to vector<128x1xi32>
    %39 = arith.addi %28, %38 : vector<128x1xi32>
    %40 = arith.select %37, %39, %28 : vector<128x1xi1>, vector<128x1xi32>
    %c8_i32 = arith.constant 8 : i32
    %41 = vector.broadcast %c8_i32 : i32 to vector<128x1xi32>
    %42 = arith.cmpi slt, %40, %41 : vector<128x1xi32>
    %cst_22 = arith.constant 0.000000e+00 : f32
    %43 = vector.shape_cast %42 : vector<128x1xi1> to vector<128x1xi1>
    %44 = vector.broadcast %43 : vector<128x1xi1> to vector<128x128xi1>
    %45 = vector.broadcast %cst_22 : f32 to vector<128x128xf32>
    %46 = arith.select %44, %21, %45 : vector<128x128xi1>, vector<128x128xf32>
    %47 = arith.mulf %46, %46 : vector<128x128xf32>
    %cst_23 = arith.constant dense<0.000000e+00> : vector<128xf32>
    %48 = vector.multi_reduction <add>, %47, %cst_23 [0] : vector<128x128xf32> to vector<128xf32>
    %49 = vector.shape_cast %48 : vector<128xf32> to vector<1x128xf32>
    %50 = arith.addf %18, %49 : vector<1x128xf32>
    %cst_24 = arith.constant 1.562500e-02 : f32
    %51 = vector.broadcast %cst_24 : f32 to vector<1x128xf32>
    %52 = arith.mulf %50, %51 : vector<1x128xf32>
    %cst_25 = arith.constant 9.99999974E-6 : f32
    %53 = vector.broadcast %cst_25 : f32 to vector<1x128xf32>
    %54 = arith.addf %52, %53 : vector<1x128xf32>
    %55 = math.rsqrt %54 : vector<1x128xf32>
    %c0_26 = arith.constant 0 : index
    %c0_27 = arith.constant 0 : index
    %56 = vector.load %arg3[%c0_26, %c0_27] : memref<1x128xf32, #tpu.memory_space<vmem>>, vector<1x128xf32>
    %57 = arith.mulf %56, %55 : vector<1x128xf32>
    %c0_28 = arith.constant 0 : index
    %c0_29 = arith.constant 0 : index
    %58 = vector.load %arg4[%c0_28, %c0_29] : memref<1x128xf32, #tpu.memory_space<vmem>>, vector<1x128xf32>
    %59 = arith.mulf %17, %57 : vector<1x128xf32>
    %60 = arith.subf %58, %59 : vector<1x128xf32>
    %c0_30 = arith.constant 0 : index
    %c0_31 = arith.constant 0 : index
    %61 = vector.load %arg6[%c0_30, %c0_31] : memref<128x128xf32, #tpu.memory_space<vmem>>, vector<128x128xf32>
    %62 = vector.broadcast %57 : vector<1x128xf32> to vector<128x128xf32>
    %63 = arith.mulf %61, %62 : vector<128x128xf32>
    %64 = vector.broadcast %60 : vector<1x128xf32> to vector<128x128xf32>
    %65 = arith.addf %63, %64 : vector<128x128xf32>
    %cst_32 = arith.constant 0.000000e+00 : f32
    %66 = vector.broadcast %cst_32 : f32 to vector<128x128xf32>
    %67 = arith.cmpf oge, %65, %66 : vector<128x128xf32>
    %cst_33 = arith.constant 2.000000e-01 : f32
    %68 = vector.broadcast %cst_33 : f32 to vector<128x128xf32>
    %69 = arith.mulf %68, %65 : vector<128x128xf32>
    %70 = arith.select %67, %65, %69 : vector<128x128xi1>, vector<128x128xf32>
    %71 = arith.truncf %70 : vector<128x128xf32> to vector<128x128xbf16>
    %c0_34 = arith.constant 0 : index
    %c0_35 = arith.constant 0 : index
    %c0_36 = arith.constant 0 : index
    %72 = vector.load %arg5[%c0_34, %c0_35, %c0_36] : memref<1x128x128xbf16, #tpu.memory_space<vmem>>, vector<1x128x128xbf16>
    %73 = vector.shape_cast %72 : vector<1x128x128xbf16> to vector<128x128xbf16>
    %74 = vector.shape_cast %71 : vector<128x128xbf16> to vector<1x128x128xbf16>
    tpu.vector_store %arg5[%c0_34, %c0_35, %c0_36], %74 {strides = array<i32>} : memref<1x128x128xbf16, #tpu.memory_space<vmem>>, vector<1x128x128xbf16>,
    return
  }
  func.func @transform_0(%arg0: i32) -> (i32, i32, i32) {
    %c0_i32 = arith.constant 0 : i32
    %c0_i32_0 = arith.constant 0 : i32
    %c0_i32_1 = arith.constant 0 : i32
    return %arg0, %c0_i32, %c0_i32_0 : i32, i32, i32
  }
  func.func @transform_1(%arg0: i32) -> (i32, i32, i32) {
    %c0_i32 = arith.constant 0 : i32
    %c0_i32_0 = arith.constant 0 : i32
    %c0_i32_1 = arith.constant 0 : i32
    %c0_i32_2 = arith.constant 0 : i32
    return %c0_i32, %c0_i32_0, %c0_i32_1 : i32, i32, i32
  }
  func.func @transform_2(%arg0: i32) -> (i32, i32) {
    %c0_i32 = arith.constant 0 : i32
    %c0_i32_0 = arith.constant 0 : i32
    %c0_i32_1 = arith.constant 0 : i32
    return %c0_i32, %c0_i32_0 : i32, i32
  }
  func.func @transform_3(%arg0: i32) -> (i32, i32) {
    %c0_i32 = arith.constant 0 : i32
    %c0_i32_0 = arith.constant 0 : i32
    %c0_i32_1 = arith.constant 0 : i32
    return %c0_i32, %c0_i32_0 : i32, i32
  }
  func.func @transform_4(%arg0: i32) -> (i32, i32, i32) {
    %c0_i32 = arith.constant 0 : i32
    %c0_i32_0 = arith.constant 0 : i32
    %c0_i32_1 = arith.constant 0 : i32
    return %arg0, %c0_i32, %c0_i32_0 : i32, i32, i32
  }
}

</mosaic_0001>

<bundles_post_ra>
// kernel: tpu_custom_call.1
= control target key start
LH: loop header
LB: loop body
LE: loop exit
PB: predicated region body
PF: predicated region fallthrough
CT: control target
= control target key end

     0   :  { %9 = vsyncpa [#allocation4], 0  ;;  %s1731_s0 = inlined_call_operand.vmem [shape: bf16[2,144,32], index: 0, kind: input, shape index: {}]   ;;  %s1732_s1 = inlined_call_operand.vmem [shape: bf16[2,32,128], index: 1, kind: input, shape index: {}]   ;;  %s1733_s2 = inlined_call_operand.vmem [shape: f32[1,128], index: 2, kind: input, shape index: {}]   ;;  %s1734_s3 = inlined_call_operand.vmem [shape: f32[1,128], index: 3, kind: input, shape index: {}]   ;;  %s1735_s4 = inlined_call_operand.hbm [shape: bf16[2,128,128], index: 4, kind: output, shape index: {}]  }
   0x1   :  { %11 = vsyncpa [#allocation4 + $0x1], 0  ;;  %s1502_s15 = smov 0   ;;  %s1504_s16 = smov 0  }
   0x2   :  { %s1506_s17 = smov 0   ;;  %s1508_s18 = smov 0  }
   0x3 LB: > { %s1523_s19 = sadd.s32 4294967295, %s1472_s18   ;;  %s1153_s20 = sadd.s32 4294967294, %s1472_s18   ;;  %s1472_s18 = sphi %s1508_s18, %s1741_s18   ;;  %s1468_s17 = sphi %s1506_s17, %s1740_s17   ;;  %s1464_s16 = sphi %s1504_s16, %s1739_s16   ;;  %s1460_s15 = sphi %s1502_s15, %s1738_s15  }
   0x4   : > { %s1527_s21 = sadd.s32 1, %s1472_s18   ;;  %s113_s22 = sadd.s32 1, %s1468_s17 }
   0x5   : > { %s110_s23 = ssub.s32 %s1472_s18, %s1527_s21  ;;  %p123_p0 = scmp.ne.s32.totalorder %s1468_s17, %s1464_s16 }
   0x6   : > { %p111_p1 = scmp.eq.s32.totalorder %s110_s23, 0  ;;  %p124_p2 = scmp.eq.s32.totalorder %s1523_s19, 1 }
   0x7   : > { %p129_p3 = scmp.ne.s32.totalorder %s1464_s16, %s1460_s15  ;;  %p130_p4 = scmp.eq.s32.totalorder %s1153_s20, 1 }
   0x8   : > { %s1538_s24 = scalar_select %p111_p1, %s1468_s17, %s113_s22  }
   0x9   : > { %p1540_p5 = por %p124_p2, %p123_p0  ;;  %p1544_p6 = por %p130_p4, %p129_p3 }
   0xa   : > { %p1156_p7 = scmp.ge.s32.totalorder %s1472_s18, 1  ;;  %p165_p8 = scmp.lt.s32.totalorder %s1472_s18, 3 }
   0xc   : > { %p166_p9 = pnand %p1156_p7, %p165_p8 }
   0xd   : > { %v1395_v0 = vld [vmem:[%s1732_s1 + $0x10] sm:$0xff] (!%p166_p9)   ;;  %p191_p10 = scmp.lt.s32.totalorder (!%p166_p9), %s1523_s19, 1  ;;  %v1396_v1 = vld [vmem:[%s1732_s1] sm:$0xff] (!%p166_p9)   ;;  %v1397_v2 = vld [vmem:[%s1732_s1 + $0x18] sm:$0xff] (!%p166_p9)   ;;  %vm276_vm0 = vcmask (!%p166_p9), 261120   ;;  %s188_s27 = sand.u32 (!%p166_p9), 1, %s1464_s16  }
   0xe   : > { %169 = sbr.rel (%p166_p9) target bundleno = 379 (0x17b), region = 36  ;;  %1297 = vmatprep.subr.bf16.mxu1 (!%p166_p9), %v1395_v0  ;;  %1317 = vmatprep.subr.bf16.mxu0 (!%p166_p9), %v1396_v1  ;;  %v1398_v3 = vld [vmem:[%s1732_s1 + $0x8] sm:$0xff] (!%p166_p9)   ;;  %s1157_s28 = sshll.u32 (!%p166_p9), %s188_s27, 6 }
   0xf   : > { %1298 = vmatpush3.bf16.msra.mxu1 (!%p166_p9), %v1395_v0  ;;  %1318 = vmatpush3.bf16.msra.mxu0 (!%p166_p9), %v1396_v1  ;;  %s1655_s29 = scalar_lea.vmem (!%p166_p9), [#allocation3], %s1157_s28  ;;  %s1229_s30 = sshll.u32 (!%p166_p9), %s1523_s19, 10 }
  0x10   : > { %1299 = vmatprep.subr.bf16.mxu1 (!%p166_p9), %v1397_v2  ;;  %1319 = vmatprep.subr.bf16.mxu0 (!%p166_p9), %v1398_v3  ;;  %s1091_s5 = sshll.u32 (!%p166_p9), %s1655_s29, 4  ;;  %s1690_s8 = scalar_lea.sflag (!%p166_p9), [#allocation4], %s188_s27  ;;  %s1679_s5 = int_to_ptr.vmem [resolvable:$true] %s1091_s5 }
  0x11   : > { %s1410_s9 = scalar_lea.vmem (!%p166_p9), %s1679_s5, 1024 }
  0x12   : > { %p1411_p11 = scmp.ne.s32.totalorder (!%p166_p9), %s1679_s5, %s1410_s9 }
  0x13   : > { %1300 = vmatpush3.bf16.msra.mxu1 (!%p166_p9), %v1397_v2  ;;  %1320 = vmatpush3.bf16.msra.mxu0 (!%p166_p9), %v1398_v3 }
  0x14   : > { %p1412_p12 = pnand (!%p166_p9), %p1411_p11, %p1540_p5 }
  0x15   : > { %s192_s7 = scalar_select %p191_p10, %s1523_s19, 1 }
  0x16   : > { %p1413_p13 = pneg %p1412_p12 }
  0x17   : > { %s1353_s10 = smul.u32 72, %s192_s7  ;;  %s1677_s7 = scalar_lea.hbm %s1735_s4, %s1229_s30 }
  0x19   : > { %s195_s13 = scalar_lea.vmem %s1731_s0, %s1353_s10  ;;  %s1474_s10 = smov [#allocation3]  }
  0x1a   : > { %v1399_v4 = vld [vmem:[%s195_s13 + $0x8] sm:$0xff]   ;;  %v1400_v5 = vld [vmem:[%s195_s13] sm:$0xff]   ;;  %v1401_v6 = vld [vmem:[%s195_s13 + $0x10] sm:$0xff]   ;;  %s1414_s11 = sshll.u32 %s1474_s10, 4  ;;  %s1415_s11 = int_to_ptr.vmem [resolvable:$false] %s1414_s11 }
  0x1b   : > { %1301 = vmatprep.mubr.msk.bf16.mxu1 %vm276_vm0, %v1399_v4  ;;  %1321 = vmatprep.mubr.msk.bf16.mxu0 %vm276_vm0, %v1400_v5  ;;  %v1402_v7 = vld [vmem:[%s195_s13 + $0x18] sm:$0xff]   ;;  %v1403_v8 = vld [vmem:[%s195_s13 + $0x20] sm:$0xff]   ;;  %v1404_v9 = vld [vmem:[%s195_s13 + $0x28] sm:$0xff]   ;;  %s1416_s12 = scalar_lea.vmem %s1415_s11, 2048  ;;  %p1417_p0 = scmp.lt.s32.totalorder %s1679_s5, %s1415_s11 }
  0x1c   : > { %1302 = vmatmul.mubr.msk.bf16.vlgmr.msra.gmra.mrb[0].mxu1 %vm276_vm0, %v1401_v6  ;;  %1322 = vmatmul.mubr.msk.bf16.vlgmr.msra.gmra.mrb[0].mxu0 %vm276_vm0, %v1399_v4  ;;  %v1405_v10 = vld [vmem:[%s195_s13 + $0x30] sm:$0xff]   ;;  %v1406_v11 = vld [vmem:[%s195_s13 + $0x38] sm:$0xff]   ;;  %v1407_v12 = vld [vmem:[%s195_s13 + $0x40] sm:$0xff]   ;;  %p1418_p1 = scmp.lt.s32.totalorder %s1416_s12, %s1410_s9 }
  0x1d   : > { %1305 = vmatprep.mubr.msk.bf16.mxu1 %vm276_vm0, %v1402_v7  ;;  %1325 = vmatprep.mubr.msk.bf16.mxu0 %vm276_vm0, %v1401_v6 }
  0x1e   : > { %p1419_p2 = por %p1418_p1, %p1417_p0 }
  0x20   : > { %p1420_p3 = pnand %p1419_p2, %p1413_p13 }
  0x24   : > { %1306 = vmatmul.mubr.msk.bf16.gmra.mrb[4].mxu1 %vm276_vm0, %v1403_v8  ;;  %1326 = vmatmul.mubr.msk.bf16.gmra.mrb[4].mxu0 %vm276_vm0, %v1402_v7 }
  0x25   : > { %1309 = vmatprep.mubr.msk.bf16.mxu1 %vm276_vm0, %v1404_v9  ;;  %1329 = vmatprep.mubr.msk.bf16.mxu0 %vm276_vm0, %v1403_v8 }
  0x2c   : > { %1310 = vmatmul.mubr.msk.bf16.gmra.mrb[8].mxu1 %vm276_vm0, %v1405_v10  ;;  %1330 = vmatmul.mubr.msk.bf16.gmra.mrb[8].mxu0 %vm276_vm0, %v1404_v9 }
  0x2d   : > { %1313 = vmatprep.mubr.msk.bf16.mxu1 %vm276_vm0, %v1406_v11  ;;  %1333 = vmatprep.mubr.msk.bf16.mxu0 %vm276_vm0, %v1405_v10 }
  0x34   : > { %1314 = vmatmul.mubr.msk.bf16.gmra.mrb[12].mxu1 %vm276_vm0, %v1407_v12  ;;  %1334 = vmatmul.mubr.msk.bf16.gmra.mrb[12].mxu0 %vm276_vm0, %v1406_v11 }
  0xef   : > { %v1303_v13 = vpop.f32.mrb[0].mxu1  ;;  %v1323_v14 = vpop.f32.mrb[0].mxu0 }
  0xf0   : > { %v1583_v15 = vadd.f32 %v1323_v14, %v1303_v13  ;;  %v335_v16 = vpop.f32.mrb[1].mxu1  ;;  %v452_v17 = vpop.f32.mrb[1].mxu0 }
  0xf1   : > { %v1585_v18 = vadd.f32 %v452_v17, %v335_v16  ;;  %v1304_v19 = vpop.f32.mrb[2].mxu1  ;;  %v1324_v20 = vpop.f32.mrb[2].mxu0 }
  0xf2   : > { %v1587_v21 = vadd.f32 %v1324_v20, %v1304_v19  ;;  %v338_v22 = vpop.f32.mrb[3].mxu1  ;;  %v455_v23 = vpop.f32.mrb[3].mxu0 }
  0xf3   : > { %v1589_v24 = vadd.f32 %v455_v23, %v338_v22 }
  0xf5   : > { %v531_v25 = vadd.f32 %v1589_v24, %v1585_v18 }
  0xf7   : > { %v532_v26 = vadd.f32 %v531_v25, %v1583_v15  ;;  %v1307_v27 = vpop.f32.mrb[4].mxu1  ;;  %v1327_v28 = vpop.f32.mrb[4].mxu0 }
  0xf8   : > { %v1594_v29 = vadd.f32 %v1327_v28, %v1307_v27  ;;  %v351_v30 = vpop.f32.mrb[5].mxu1  ;;  %v468_v31 = vpop.f32.mrb[5].mxu0 }
  0xf9   : > { %v1596_v32 = vadd.f32 %v468_v31, %v351_v30  ;;  %v1308_v33 = vpop.f32.mrb[6].mxu1  ;;  %v1328_v34 = vpop.f32.mrb[6].mxu0  ;;  %v533_v35 = vadd.f32 %v532_v26, %v1587_v21 }
  0xfa   : > { %v1599_v36 = vadd.f32 %v1328_v34, %v1308_v33  ;;  %v354_v37 = vpop.f32.mrb[7].mxu1  ;;  %v471_v38 = vpop.f32.mrb[7].mxu0 }
  0xfb   : > { %v1601_v39 = vadd.f32 %v471_v38, %v354_v37  ;;  %v534_v40 = vadd.f32 %v533_v35, %v1596_v32 }
  0xfd   : > { %v535_v41 = vadd.f32 %v534_v40, %v1601_v39 }
  0xff   : > { %v536_v42 = vadd.f32 %v535_v41, %v1594_v29  ;;  %v1311_v43 = vpop.f32.mrb[8].mxu1  ;;  %v1331_v44 = vpop.f32.mrb[8].mxu0 }
 0x100   : > { %v1606_v45 = vadd.f32 %v1331_v44, %v1311_v43  ;;  %v367_v46 = vpop.f32.mrb[9].mxu1  ;;  %v484_v47 = vpop.f32.mrb[9].mxu0 }
 0x101   : > { %v1608_v48 = vadd.f32 %v484_v47, %v367_v46  ;;  %v1312_v49 = vpop.f32.mrb[10].mxu1  ;;  %v1332_v50 = vpop.f32.mrb[10].mxu0  ;;  %v537_v51 = vadd.f32 %v536_v42, %v1599_v36 }
 0x102   : > { %v1611_v52 = vadd.f32 %v1332_v50, %v1312_v49  ;;  %v370_v53 = vpop.f32.mrb[11].mxu1  ;;  %v487_v54 = vpop.f32.mrb[11].mxu0 }
 0x103   : > { %v1613_v55 = vadd.f32 %v487_v54, %v370_v53  ;;  %v538_v56 = vadd.f32 %v537_v51, %v1608_v48 }
 0x105   : > { %v539_v57 = vadd.f32 %v538_v56, %v1613_v55 }
 0x107   : > { %v540_v58 = vadd.f32 %v539_v57, %v1606_v45  ;;  %v1315_v59 = vpop.f32.mrb[12].mxu1  ;;  %v1335_v60 = vpop.f32.mrb[12].mxu0 }
 0x108   : > { %v1618_v61 = vadd.f32 %v1335_v60, %v1315_v59  ;;  %v383_v62 = vpop.f32.mrb[13].mxu1  ;;  %v500_v63 = vpop.f32.mrb[13].mxu0 }
 0x109   : > { %v501_v0 = vadd.f32 %v500_v63, %v383_v62  ;;  %v1316_v1 = vpop.f32.mrb[14].mxu1  ;;  %v1336_v2 = vpop.f32.mrb[14].mxu0  ;;  %v541_v3 = vadd.f32 %v540_v58, %v1611_v52  ;;  %v906_v63 = vlaneseq }
 0x10a   : > { %v1621_v4 = vadd.f32 %v1336_v2, %v1316_v1  ;;  %v386_v5 = vpop.f32.mrb[15].mxu1  ;;  %v503_v6 = vpop.f32.mrb[15].mxu0  ;;  %v900_v2 = vld [vmem:[%s1733_s2] sm:$0x1] }
 0x10b   : > { %v504_v7 = vadd.f32 %v503_v6, %v386_v5  ;;  %v542_v8 = vadd.f32 %v541_v3, %v501_v0  ;;  %v907_v1 = vshrl.u32 %v906_v63, 7 }
 0x10d   : > { %v543_v9 = vadd.f32 %v542_v8, %v504_v7  ;;  %v908_v3 = vsub.s32 0, %v907_v1  ;;  %v902_v8 = vld [vmem:[%s1734_s3] sm:$0x1] }
 0x10f   : > { %v544_v10 = vadd.f32 %v543_v9, %v1618_v61 }
 0x111   : > { %v545_v11 = vadd.f32 %v544_v10, %v1621_v4 }
 0x113   : > { %v546_v12 = vrot.slane %v545_v11, 4 }
 0x115   : > { %v547_v13 = vadd.f32 %v546_v12, %v545_v11 }
 0x117   : > { %v548_v14 = vrot.slane %v547_v13, 2 }
 0x119   : > { %v549_v16 = vadd.f32 %v548_v14, %v547_v13 }
 0x11b   : > { %v550_v17 = vrot.slane %v549_v16, 1 }
 0x11d   : > { %v551_v19 = vadd.f32 %v550_v17, %v549_v16 }
 0x11f   : > { %v553_v20 = vmul.f32 0.015625, %v551_v19 }
 0x121   : > { %v570_v22 = vsub.f32 %v1585_v18, %v553_v20  ;;  %v572_v23 = vsub.f32 %v1583_v15, %v553_v20  ;;  %v574_v25 = vsub.f32 %v1596_v32, %v553_v20  ;;  %v576_v26 = vsub.f32 %v1594_v29, %v553_v20 }
 0x122   : > { %v578_v30 = vsub.f32 %v1608_v48, %v553_v20  ;;  %v580_v34 = vsub.f32 %v1606_v45, %v553_v20  ;;  %v582_v38 = vsub.f32 %v501_v0, %v553_v20  ;;  %v584_v42 = vsub.f32 %v1618_v61, %v553_v20 }
 0x123   : > { %v859_v27 = vmul.f32 %v570_v22, %v570_v22  ;;  %v861_v28 = vmul.f32 %v572_v23, %v572_v23  ;;  %v863_v31 = vmul.f32 %v574_v25, %v574_v25  ;;  %v865_v35 = vmul.f32 %v576_v26, %v576_v26 }
 0x124   : > { %v867_v40 = vmul.f32 %v578_v30, %v578_v30  ;;  %v869_v43 = vmul.f32 %v580_v34, %v580_v34  ;;  %v871_v46 = vmul.f32 %v582_v38, %v582_v38  ;;  %v873_v49 = vmul.f32 %v584_v42, %v584_v42 }
 0x125   : > { %v876_v33 = vadd.f32 %v861_v28, %v859_v27 }
 0x127   : > { %v878_v37 = vadd.f32 %v876_v33, %v863_v31 }
 0x129   : > { %v880_v41 = vadd.f32 %v878_v37, %v865_v35 }
 0x12b   : > { %v882_v44 = vadd.f32 %v880_v41, %v867_v40 }
 0x12d   : > { %v884_v47 = vadd.f32 %v882_v44, %v869_v43 }
 0x12f   : > { %v886_v50 = vadd.f32 %v884_v47, %v871_v46 }
 0x131   : > { %v888_v51 = vadd.f32 %v886_v50, %v873_v49 }
 0x133   : > { %v890_v53 = vrot.slane %v888_v51, 4 }
 0x135   : > { %v891_v54 = vadd.f32 %v890_v53, %v888_v51 }
 0x137   : > { %v892_v56 = vrot.slane %v891_v54, 2 }
 0x139   : > { %v893_v57 = vadd.f32 %v892_v56, %v891_v54 }
 0x13b   : > { %v894_v58 = vrot.slane %v893_v57, 1 }
 0x13d   : > { %v895_v59 = vadd.f32 %v894_v58, %v893_v57 }
 0x13f   : > { %v897_v60 = vmul.f32 0.015625, %v895_v59 }
 0x141   : > { %v898_v62 = vadd.f32 1e-05, %v897_v60 }
 0x143   : > { %1408 = vrsqrt.f32 %v898_v62 }
 0x14d   : > { %v1409_v5 = vpop.eup %1408 }
 0x14e   : > { %v901_v6 = vmul.f32 %v1409_v5, %v900_v2 }
 0x150   : > { %v903_v9 = vmul.f32 %v901_v6, %v553_v20  ;;  %v909_v10 = vrot.slane %v901_v6, %v908_v3 }
 0x152   : > { %v904_v11 = vsub.f32 %v902_v8, %v903_v9  ;;  %v923_v12 = vmul.f32 %v909_v10, %v501_v0  ;;  %v924_v13 = vmul.f32 %v909_v10, %v504_v7  ;;  %v911_v14 = vmul.f32 %v909_v10, %v1585_v18 }
 0x153   : > { %v912_v16 = vmul.f32 %v909_v10, %v1589_v24  ;;  %v913_v17 = vmul.f32 %v909_v10, %v1583_v15  ;;  %v914_v19 = vmul.f32 %v909_v10, %v1587_v21  ;;  %v915_v22 = vmul.f32 %v909_v10, %v1596_v32 }
 0x154   : > { %v931_v23 = vrot.slane %v904_v11, %v908_v3  ;;  %v916_v25 = vmul.f32 %v909_v10, %v1601_v39  ;;  %v917_v20 = vmul.f32 %v909_v10, %v1594_v29  ;;  %v918_v0 = vmul.f32 %v909_v10, %v1599_v36 }
 0x155   : > { %v919_v7 = vmul.f32 %v909_v10, %v1608_v48  ;;  %v920_v18 = vmul.f32 %v909_v10, %v1613_v55  ;;  %v921_v24 = vmul.f32 %v909_v10, %v1606_v45  ;;  %v922_v15 = vmul.f32 %v909_v10, %v1611_v52 }
 0x156   : > { %v945_v26 = vadd.f32 %v931_v23, %v923_v12  ;;  %v946_v21 = vadd.f32 %v931_v23, %v924_v13  ;;  %v925_v32 = vmul.f32 %v909_v10, %v1618_v61  ;;  %v926_v27 = vmul.f32 %v909_v10, %v1621_v4 }
 0x157   : > { %v933_v39 = vadd.f32 %v931_v23, %v911_v14  ;;  %v934_v29 = vadd.f32 %v931_v23, %v912_v16  ;;  %v935_v28 = vadd.f32 %v931_v23, %v913_v17  ;;  %v936_v36 = vadd.f32 %v931_v23, %v914_v19 }
 0x158   : > { %vm961_vm1 = vcmp.ge.f32.partialorder %v945_v26, 0.0  ;;  %vm962_vm2 = vcmp.ge.f32.partialorder %v946_v21, 0.0  ;;  %v977_v48 = vmul.f32 0.2, %v945_v26  ;;  %v978_v55 = vmul.f32 0.2, %v946_v21 }
 0x159   : > { %v937_v30 = vadd.f32 %v931_v23, %v915_v22  ;;  %v938_v45 = vadd.f32 %v931_v23, %v916_v25  ;;  %v939_v31 = vadd.f32 %v931_v23, %v917_v20  ;;  %v940_v52 = vadd.f32 %v931_v23, %v918_v0 }
 0x15a   : > { %v993_v33 = vsel %vm961_vm1, %v945_v26, %v977_v48  ;;  %v994_v34 = vsel %vm962_vm2, %v946_v21, %v978_v55  ;;  %v941_v35 = vadd.f32 %v931_v23, %v919_v7  ;;  %v942_v61 = vadd.f32 %v931_v23, %v920_v18 }
 0x15b   : > { %v1263_v37 = vpack.c.bf16 %v994_v34, %v993_v33  ;;  %v943_v4 = vadd.f32 %v931_v23, %v921_v24  ;;  %v944_v38 = vadd.f32 %v931_v23, %v922_v15  ;;  %v947_v40 = vadd.f32 %v931_v23, %v925_v32 }
 0x15c   : > { %v948_v41 = vadd.f32 %v931_v23, %v926_v27  ;;  %vm949_vm3 = vcmp.ge.f32.partialorder %v933_v39, 0.0  ;;  %vm950_vm4 = vcmp.ge.f32.partialorder %v934_v29, 0.0  ;;  %vm951_vm5 = vcmp.ge.f32.partialorder %v935_v28, 0.0 }
 0x15d   : > { %1275 = vst [vmem:[%s1655_s29 + $0x30] sm:$0xff] %v1263_v37   ;;  %vm952_vm6 = vcmp.ge.f32.partialorder %v936_v36, 0.0  ;;  %vm953_vm7 = vcmp.ge.f32.partialorder %v937_v30, 0.0  ;;  %vm954_vm8 = vcmp.ge.f32.partialorder %v938_v45, 0.0  ;;  %vm955_vm9 = vcmp.ge.f32.partialorder %v939_v31, 0.0 }
 0x15e   : > { %vm956_vm10 = vcmp.ge.f32.partialorder %v940_v52, 0.0  ;;  %vm957_vm11 = vcmp.ge.f32.partialorder %v941_v35, 0.0  ;;  %vm958_vm12 = vcmp.ge.f32.partialorder %v942_v61, 0.0  ;;  %vm959_vm13 = vcmp.ge.f32.partialorder %v943_v4, 0.0 }
 0x15f   : > { %vm960_vm14 = vcmp.ge.f32.partialorder %v944_v38, 0.0  ;;  %vm963_vm15 = vcmp.ge.f32.partialorder %v947_v40, 0.0  ;;  %vm964_vm0 = vcmp.ge.f32.partialorder %v948_v41, 0.0  ;;  %v965_v42 = vmul.f32 0.2, %v933_v39 }
 0x160   : > { %v966_v43 = vmul.f32 0.2, %v934_v29  ;;  %v967_v44 = vmul.f32 0.2, %v935_v28  ;;  %v968_v46 = vmul.f32 0.2, %v936_v36 }
 0x161   : > { %v969_v47 = vmul.f32 0.2, %v937_v30  ;;  %v970_v49 = vmul.f32 0.2, %v938_v45  ;;  %v971_v50 = vmul.f32 0.2, %v939_v31  ;;  %v981_v51 = vsel %vm949_vm3, %v933_v39, %v965_v42 }
 0x162   : > { %v972_v53 = vmul.f32 0.2, %v940_v52  ;;  %v973_v54 = vmul.f32 0.2, %v941_v35  ;;  %v974_v56 = vmul.f32 0.2, %v942_v61  ;;  %v982_v57 = vsel %vm950_vm4, %v934_v29, %v966_v43 }
 0x163   : > { %v975_v58 = vmul.f32 0.2, %v943_v4  ;;  %v976_v59 = vmul.f32 0.2, %v944_v38  ;;  %v979_v60 = vmul.f32 0.2, %v947_v40  ;;  %v983_v62 = vsel %vm951_vm5, %v935_v28, %v967_v44 }
 0x164   : > { %v980_v63 = vmul.f32 0.2, %v948_v41  ;;  %v984_v1 = vsel %vm952_vm6, %v936_v36, %v968_v46  ;;  %v985_v2 = vsel %vm953_vm7, %v937_v30, %v969_v47  ;;  %v986_v3 = vsel %vm954_vm8, %v938_v45, %v970_v49 }
 0x165   : > { %v987_v5 = vsel %vm955_vm9, %v939_v31, %v971_v50  ;;  %v988_v6 = vsel %vm956_vm10, %v940_v52, %v972_v53  ;;  %v989_v8 = vsel %vm957_vm11, %v941_v35, %v973_v54  ;;  %v990_v9 = vsel %vm958_vm12, %v942_v61, %v974_v56 }
 0x166   : > { %v991_v10 = vsel %vm959_vm13, %v943_v4, %v975_v58  ;;  %v992_v11 = vsel %vm960_vm14, %v944_v38, %v976_v59  ;;  %v995_v12 = vsel %vm963_vm15, %v947_v40, %v979_v60  ;;  %v996_v13 = vsel %vm964_vm0, %v948_v41, %v980_v63 }
 0x167   : > { %v1233_v14 = vpack.c.bf16 %v982_v57, %v981_v51  ;;  %v1238_v16 = vpack.c.bf16 %v984_v1, %v983_v62  ;;  %v1243_v17 = vpack.c.bf16 %v986_v3, %v985_v2  ;;  %v1248_v19 = vpack.c.bf16 %v988_v6, %v987_v5 }
 0x168   : > { %v1253_v22 = vpack.c.bf16 %v990_v9, %v989_v8  ;;  %v1258_v23 = vpack.c.bf16 %v992_v11, %v991_v10  ;;  %v1268_v25 = vpack.c.bf16 %v996_v13, %v995_v12 }
 0x169   : > { %1234 = vst [vmem:[%s1655_s29] sm:$0xff] %v1233_v14   ;;  %1270 = vst [vmem:[%s1655_s29 + $0x8] sm:$0xff] %v1238_v16  }
 0x16a   : > { %1271 = vst [vmem:[%s1655_s29 + $0x10] sm:$0xff] %v1243_v17   ;;  %1272 = vst [vmem:[%s1655_s29 + $0x18] sm:$0xff] %v1248_v19  }
 0x16b   : > { %1273 = vst [vmem:[%s1655_s29 + $0x20] sm:$0xff] %v1253_v22   ;;  %1274 = vst [vmem:[%s1655_s29 + $0x28] sm:$0xff] %v1258_v23  }
 0x16c   : > { %1276 = vst [vmem:[%s1655_s29 + $0x38] sm:$0xff] %v1268_v25  }
 0x16d   : > { %1423 = shalt.err (!%p1420_p3)
}
 0x16e   : > { %s1424_s13 = scalar_lea.hbm %s1677_s7, 1024  ;;  %s1428_s22 = scalar_lea.hbm %s1735_s4, 2048 }
 0x16f   : > { %p1425_p4 = scmp.ne.s32.totalorder %s1677_s7, %s1424_s13  ;;  %p1429_p9 = scmp.lt.u32.totalorder %s1677_s7, %s1735_s4 }
 0x170   : > { %p1430_p10 = scmp.lt.u32.totalorder %s1428_s22, %s1424_s13  ;;  %p1432_p12 = scmp.lt.u32.totalorder %s1424_s13, %s1677_s7 }
 0x171   : > { %p1426_p7 = pnand %p1425_p4, %p1540_p5 }
 0x172   : > { %p1431_p11 = por %p1430_p10, %p1429_p9 }
 0x173   : > { %p1427_p8 = pneg %p1426_p7 }
 0x174   : > { %p1433_p13 = por %p1432_p12, %p1431_p11 }
 0x176   : > { %p1434_p0 = pnand %p1433_p13, %p1427_p8 }
 0x178   : > { %1437 = shalt.err (!%p1434_p0)
}
 0x179   : > { %s1475_s28 = smov 64   ;;  %s1476_s29 = smov 4  }
 0x17a   : > { %1354 = dma.vmem_to_hbm [thread:$0]  (%p1540_p5), %s1679_s5, 1024, %s1677_s7, %s1690_s8, %s1475_s28, %s1475_s28, %s1476_s29  }
 0x17b PF: > { %p1360_p1 = scmp.ge.s32.totalorder %s1472_s18, 2  ;;  %s1106_s30 = sand.u32 1, %s1460_s15  }
 0x17c   : > { %s1107_s19 = scalar_lea.sflag [#allocation4], %s1106_s30 }
 0x17d   : > { %p1357_p2 = pnand %p1360_p1, %p1544_p6 }
 0x17f   : > { %1455 = dma.done.wait (!%p1357_p2), %s1107_s19, 1024  }
 0x180   : > { %1457 = vsyncadd (!%p1357_p2), %s1107_s19, 4294966272  ;;  %p14_p3 = scmp.ge.s32.totalorder %s1527_s21, 4   ;;  %s1738_s15 = smov %s1464_s16 }
 0x181   : > { %s1739_s16 = smov %s1468_s17  ;;  %s1740_s17 = smov %s1538_s24 }
 0x182   : > { %s1741_s18 = smov %s1527_s21  ;;  %16 = sbr.rel (!%p14_p3) target bundleno = 3 (0x3), region = 72 }
 0x189   :  { %1112 = vsyncpa [#allocation4], 1 }
 0x18a   :  { %1114 = vsyncpa [#allocation4 + $0x1], 1 }

</bundles_post_ra>
